<compile_context>
chip_gen: v7x
topology: tpu7x:2x2x1
jax: 0.10.0
libtpu: 0.0.40
codegen_flags: <defaults>
</compile_context>

<pallas_src>
from functools import partial

import jax
import jax.numpy as jnp
from jax.experimental import pallas as pl
from jax.experimental.pallas import tpu as pltpu

_LANES = 128
_SUBLANES = 8


def _dropout_kernel(x_ref, bits_ref, o_ref, *, threshold: int, scale: float):
    # 24-bit uniform integer per element (shift first so the int32 cast is safe).
    r = (bits_ref[...] >> 8).astype(jnp.int32)
    keep = r < threshold                       # P(keep) = threshold / 2^24 = 1 - p
    xv = x_ref[...].astype(jnp.float32) * jnp.float32(scale)
    o_ref[...] = jnp.where(keep, xv, jnp.float32(0.0)).astype(o_ref.dtype)


def my_dropout(x: jax.Array, p: float = 0.5, *, seed: int = 0,
               training: bool = True) -> jax.Array:
    if p < 0 or p > 1:
        raise ValueError(
            "dropout probability has to be between 0 and 1, but got {}".format(p))
    if not training or p == 0.0:
        return x
    if p == 1.0:
        return jnp.zeros_like(x)

    orig_shape = x.shape
    dtype = x.dtype
    itemsize = jnp.dtype(dtype).itemsize

    # Flatten to a lane-dense 2D slab; pad only the tail remainder (< 1024 elems).
    n = x.size
    tile = _LANES * _SUBLANES
    n_pad = pl.cdiv(n, tile) * tile
    pad = n_pad - n
    flat = x.reshape(-1)
    if pad:
        flat = jnp.pad(flat, (0, pad))
    rows = n_pad // _LANES
    x2d = flat.reshape(rows, _LANES)

    # One uint32 of randomness per element (counter-based threefry; no extra
    # dependence on TPU-only PRNG primitives).
    key = jax.random.PRNGKey(seed)
    bits2d = jax.random.bits(key, (rows, _LANES), dtype=jnp.uint32)

    keep_prob = 1.0 - float(p)
    threshold = min(max(int(round(keep_prob * (1 << 24))), 0), (1 << 24) - 1)
    scale = 1.0 / keep_prob

    # Row-block tiling: 1024 rows x 128 lanes (512 KiB per f32 block).
    block_rows = min(1024, rows)          # rows is always a multiple of 8
    grid = (pl.cdiv(rows, block_rows),)

    out2d = pl.pallas_call(
        partial(_dropout_kernel, threshold=threshold, scale=scale),
        out_shape=jax.ShapeDtypeStruct((rows, _LANES), dtype),
        grid=grid,
        in_specs=[
            pl.BlockSpec((block_rows, _LANES), lambda i: (i, 0)),   # x
            pl.BlockSpec((block_rows, _LANES), lambda i: (i, 0)),   # random bits
        ],
        out_specs=pl.BlockSpec((block_rows, _LANES), lambda i: (i, 0)),
        compiler_params=pltpu.CompilerParams(
            dimension_semantics=("parallel",)),
        cost_estimate=pl.CostEstimate(
            flops=2 * n,
            transcendentals=0,
            bytes_accessed=n_pad * (2 * itemsize + 4)),
    )(x2d, bits2d)

    out = out2d.reshape(-1)
    if pad:
        out = out[:n]
    return out.reshape(orig_shape)


if __name__ == "__main__":
    key = jax.random.PRNGKey(0)
    # Small NCHW-style input, consistent with typical use of the module.
    x = jax.random.normal(key, (2, 4, 16, 16), dtype=jnp.float32)

    p = 0.5
    y_train = my_dropout(x, p=p, seed=0, training=True)
    y_eval = my_dropout(x, p=p, seed=0, training=False)
    jax.block_until_ready(y_train)
    jax.block_until_ready(y_eval)

    # Sanity checks on dropout semantics.
    assert y_train.shape == x.shape and y_train.dtype == x.dtype
    # Eval mode is identity.
    assert bool(jnp.all(y_eval == x))
    # Kept elements are exactly x / (1 - p), dropped are exactly 0.
    kept = y_train != 0
    assert bool(jnp.allclose(jnp.where(kept, y_train, 0.0),
                             jnp.where(kept, x / (1.0 - p), 0.0),
                             rtol=1e-6, atol=1e-6))
    frac_kept = float(jnp.mean(kept.astype(jnp.float32)))
    assert 0.3 < frac_kept < 0.7  # ~1-p on average

    print("KERNEL_OK")
</pallas_src>

<mosaic_0001>
module attributes {stable_mosaic.version = 11 : i64} {
  func.func @_dropout_kernel(%arg0: i32, %arg1: memref<16x128xf32, #tpu.memory_space<vmem>>, %arg2: memref<16x128xi32, #tpu.memory_space<vmem>>, %arg3: memref<16x128xf32, #tpu.memory_space<vmem>>) attributes {dimension_semantics = [#tpu.dimension_semantics<parallel>], iteration_bounds = array<i64: 1>, scalar_prefetch = 0 : i64, scratch_operands = 0 : i64, tpu.core_type = #tpu.core_type<tc>, window_params = [{transform_indices = @transform_0, window_bounds = array<i64: 16, 128>}, {transform_indices = @transform_1, window_bounds = array<i64: 16, 128>}, {transform_indices = @transform_2, window_bounds = array<i64: 16, 128>}]} {
    %c0 = arith.constant 0 : index
    %c0_0 = arith.constant 0 : index
    %0 = vector.load %arg2[%c0, %c0_0] : memref<16x128xi32, #tpu.memory_space<vmem>>, vector<16x128xi32>
    %c8_i32 = arith.constant 8 : i32
    %1 = vector.broadcast %c8_i32 : i32 to vector<16x128xi32>
    %2 = arith.shrui %0, %1 : vector<16x128xi32>
    %c8388608_i32 = arith.constant 8388608 : i32
    %3 = vector.broadcast %c8388608_i32 : i32 to vector<16x128xi32>
    %4 = arith.cmpi slt, %2, %3 : vector<16x128xi32>
    %c0_1 = arith.constant 0 : index
    %c0_2 = arith.constant 0 : index
    %5 = vector.load %arg1[%c0_1, %c0_2] : memref<16x128xf32, #tpu.memory_space<vmem>>, vector<16x128xf32>
    %cst = arith.constant 2.000000e+00 : f32
    %6 = vector.broadcast %cst : f32 to vector<16x128xf32>
    %7 = arith.mulf %5, %6 : vector<16x128xf32>
    %cst_3 = arith.constant 0.000000e+00 : f32
    %8 = vector.broadcast %cst_3 : f32 to vector<16x128xf32>
    %9 = arith.select %4, %7, %8 : vector<16x128xi1>, vector<16x128xf32>
    %c0_4 = arith.constant 0 : index
    %c0_5 = arith.constant 0 : index
    %10 = vector.load %arg3[%c0_4, %c0_5] : memref<16x128xf32, #tpu.memory_space<vmem>>, vector<16x128xf32>
    tpu.vector_store %arg3[%c0_4, %c0_5], %9 {strides = array<i32>} : memref<16x128xf32, #tpu.memory_space<vmem>>, vector<16x128xf32>,
    return
  }
  func.func @transform_0(%arg0: i32) -> (i32, i32) {
    %c0_i32 = arith.constant 0 : i32
    %c0_i32_0 = arith.constant 0 : i32
    return %arg0, %c0_i32 : i32, i32
  }
  func.func @transform_1(%arg0: i32) -> (i32, i32) {
    %c0_i32 = arith.constant 0 : i32
    %c0_i32_0 = arith.constant 0 : i32
    return %arg0, %c0_i32 : i32, i32
  }
  func.func @transform_2(%arg0: i32) -> (i32, i32) {
    %c0_i32 = arith.constant 0 : i32
    %c0_i32_0 = arith.constant 0 : i32
    return %arg0, %c0_i32 : i32, i32
  }
}

</mosaic_0001>

<bundles_post_ra>
// kernel: tpu_custom_call.1
= control target key start
LH: loop header
LB: loop body
LE: loop exit
PB: predicated region body
PF: predicated region fallthrough
CT: control target
= control target key end

     0   :  { %7 = vsyncpa [#allocation3], 0  ;;  %s214_s0 = inlined_call_operand.hbm [shape: f32[16,128], index: 0, kind: input, shape index: {}]   ;;  %s215_s1 = inlined_call_operand.hbm [shape: u32[16,128], index: 1, kind: input, shape index: {}]   ;;  %s216_s2 = inlined_call_operand.hbm [shape: f32[16,128], index: 2, kind: output, shape index: {}]  }
   0x1   :  { %8 = vsyncpa [#allocation6], 0 }
   0x2   :  { %9 = vsyncpa [#allocation4], 0  ;;  %s149_s9 = smov [#allocation2]   ;;  %s77_s13 = scalar_lea.hbm %s214_s0, 256 }
   0x3   :  { %s15_s10 = sshll.u32 %s149_s9, 4  ;;  %p78_p0 = scmp.ne.s32.totalorder %s214_s0, %s77_s13  ;;  %s16_s10 = int_to_ptr.vmem [resolvable:$true] %s15_s10 }
   0x4   :  { %p81_p1 = scmp.lt.u32.totalorder %s77_s13, %s214_s0 }
   0x6   :  { %p83_p2 = pnand %p81_p1, %p78_p0 }
   0x8   :  { %86 = shalt.err (!%p83_p2)
}
   0x9   :  { %s87_s18 = scalar_lea.vmem %s16_s10, 256  ;;  %p92_p4 = scmp.lt.s32.totalorder %s16_s10, %s16_s10 }
   0xa   :  { %p88_p3 = scmp.ne.s32.totalorder %s16_s10, %s87_s18  ;;  %p93_p5 = scmp.lt.s32.totalorder %s87_s18, %s87_s18 }
   0xc   :  { %p94_p6 = por %p93_p5, %p92_p4 }
   0xe   :  { %p95_p7 = pnand %p94_p6, %p88_p3 }
  0x10   :  { %98 = shalt.err (!%p95_p7)
}
  0x11   :  { %s150_s19 = smov 128   ;;  %s151_s20 = smov 8  }
  0x12   :  { %21 = dma.hbm_to_vmem [thread:$0]  %s214_s0, 256, %s16_s10, [#allocation3], %s150_s19, %s150_s19, %s151_s20  }
  0x13   :  { %s152_s23 = smov [#allocation5]   ;;  %s99_s27 = scalar_lea.hbm %s215_s1, 256 }
  0x14   :  { %s27_s24 = sshll.u32 %s152_s23, 4  ;;  %p100_p8 = scmp.ne.s32.totalorder %s215_s1, %s99_s27  ;;  %s28_s24 = int_to_ptr.vmem [resolvable:$true] %s27_s24 }
  0x15   :  { %p103_p9 = scmp.lt.u32.totalorder %s99_s27, %s215_s1 }
  0x17   :  { %p105_p10 = pnand %p103_p9, %p100_p8 }
  0x19   :  { %108 = shalt.err (!%p105_p10)
}
  0x1a   :  { %s109_s4 = scalar_lea.vmem %s28_s24, 256  ;;  %p114_p12 = scmp.lt.s32.totalorder %s28_s24, %s28_s24 }
  0x1b   :  { %p110_p11 = scmp.ne.s32.totalorder %s28_s24, %s109_s4  ;;  %p115_p13 = scmp.lt.s32.totalorder %s109_s4, %s109_s4 }
  0x1d   :  { %p116_p0 = por %p115_p13, %p114_p12 }
  0x1f   :  { %p117_p1 = pnand %p116_p0, %p110_p11 }
  0x21   :  { %120 = shalt.err (!%p117_p1)
}
  0x22   :  { %33 = dma.hbm_to_vmem [thread:$0]  %s215_s1, 256, %s28_s24, [#allocation6], %s150_s19, %s150_s19, %s151_s20  }
  0x23   :  { %143 = dma.done.wait [#allocation3], 256  }
  0x24   :  { %144 = vsyncadd [#allocation3], 4294967040 }
  0x25   :  { %145 = dma.done.wait [#allocation6], 256  }
  0x26   :  { %146 = vsyncadd [#allocation6], 4294967040  ;;  %v40_v0 = vld [vmem:[#allocation5] sm:$0xff]  ;;  %v46_v1 = vld [vmem:[#allocation2] sm:$0xff]  ;;  %s153_s6 = smov [#allocation7]  }
  0x27   :  { %v41_v2 = vld [vmem:[#allocation5 + $0x8] sm:$0xff]  ;;  %s59_s7 = sshll.u32 %s153_s6, 4  ;;  %v42_v3 = vshrl.u32 %v40_v0, 8  ;;  %v48_v4 = vmul.f32 2.0, %v46_v1  ;;  %v47_v6 = vld [vmem:[#allocation2 + $0x8] sm:$0xff]  ;;  %s60_s7 = int_to_ptr.vmem [resolvable:$true] %s59_s7 }
  0x28   :  { %v43_v5 = vshrl.u32 %v41_v2, 8  ;;  %v49_v7 = vmul.f32 2.0, %v47_v6  ;;  %s121_s1 = scalar_lea.vmem %s60_s7, 256  ;;  %p126_p3 = scmp.lt.s32.totalorder %s60_s7, %s60_s7 }
  0x29   :  { %vm44_vm0 = vcmp.lt.s32.totalorder %v42_v3, 8388608  ;;  %p122_p2 = scmp.ne.s32.totalorder %s60_s7, %s121_s1  ;;  %p127_p4 = scmp.lt.s32.totalorder %s121_s1, %s121_s1 }
  0x2a   :  { %vm45_vm1 = vcmp.lt.s32.totalorder %v43_v5, 8388608  ;;  %v50_v8 = vsel %vm44_vm0, %v48_v4, 0.0 }
  0x2b   :  { %v51_v9 = vsel %vm45_vm1, %v49_v7, 0.0  ;;  %52 = vst [vmem:[#allocation7] sm:$0xff] %v50_v8  ;;  %p128_p5 = por %p127_p4, %p126_p3 }
  0x2c   :  { %53 = vst [vmem:[#allocation7 + $0x8] sm:$0xff] %v51_v9 }
  0x2d   :  { %p129_p6 = pnand %p128_p5, %p122_p2 }
  0x2f   :  { %132 = shalt.err (!%p129_p6)
}
  0x30   :  { %s133_s10 = scalar_lea.hbm %s216_s2, 256 }
  0x31   :  { %p134_p7 = scmp.ne.s32.totalorder %s216_s2, %s133_s10  ;;  %p137_p8 = scmp.lt.u32.totalorder %s133_s10, %s216_s2 }
  0x33   :  { %p139_p9 = pnand %p137_p8, %p134_p7 }
  0x35   :  { %142 = shalt.err (!%p139_p9)
}
  0x36   :  { %65 = dma.vmem_to_hbm [thread:$0]  %s60_s7, 256, %s216_s2, [#allocation4], %s150_s19, %s150_s19, %s151_s20  }
  0x37   :  { %147 = dma.done.wait [#allocation4], 256  }
  0x38   :  { %148 = vsyncadd [#allocation4], 4294967040 }
  0x39   :  { %69 = vsyncpa [#allocation3], 1 }
  0x3a   :  { %70 = vsyncpa [#allocation6], 1 }
  0x3b   :  { %71 = vsyncpa [#allocation4], 1 }

</bundles_post_ra>
